<compile_context>
chip_gen: v5e
topology: v5e:2x2
jax: 0.10.0
libtpu: 0.0.40
codegen_flags: <defaults>
</compile_context>

<pallas_src>
import jax
import jax.numpy as jnp
from jax.experimental import pallas as pl
from jax.experimental.pallas import tpu as pltpu

IN_FEATURES = 6
OUT_FEATURES = 3
TILE_B = 32768  # lane-axis (batch) tile: multiple of 128, ~2.4 MiB double-buffered


def _model_kernel(x_ref, w_ref, b_ref, out_ref):
    # x_ref:   (6, tb) VMEM, feature-major -> batch is lane-dense
    # w_ref:   (3, 6)  SMEM scalars (first linear; cols [:3] double as 2nd linear)
    # b_ref:   (3,)    SMEM scalars
    # out_ref: (3, tb) VMEM

    # First linear + sigmoid, one output row at a time (VPU scalar-splat FMAs).
    s = []
    for o in range(OUT_FEATURES):
        acc = w_ref[o, 0] * x_ref[pl.ds(0, 1), :]
        for i in range(1, IN_FEATURES):
            acc = acc + w_ref[o, i] * x_ref[pl.ds(i, 1), :]
        h = acc + b_ref[o]
        # sigmoid(h) == 0.5 * tanh(0.5 * h) + 0.5  (single EUP transcendental)
        s.append(0.5 * jnp.tanh(0.5 * h) + 0.5)

    # Second linear restricted to weight[:, :3] (zero-pad patch; see header).
    # u and v are identical, so we emit a single output slab.
    for o in range(OUT_FEATURES):
        acc = w_ref[o, 0] * s[0]
        for j in range(1, OUT_FEATURES):
            acc = acc + w_ref[o, j] * s[j]
        out_ref[pl.ds(o, 1), :] = (acc + b_ref[o]).astype(out_ref.dtype)


def model_forward(x, weight, bias):
    """x: (B, 6) f32, weight: (3, 6) f32, bias: (3,) f32 -> (u, v) each (B, 3)."""
    B = x.shape[0]

    # Feature-major layout so the batch dimension sits on the 128-lane axis.
    x_t = x.T  # (6, B)

    tb = B if B <= TILE_B else TILE_B       # full-extent last dim is legal
    grid = (pl.cdiv(B, tb),)                # ragged last block handled by Pallas

    cost = pl.CostEstimate(
        flops=2 * B * OUT_FEATURES * (IN_FEATURES + OUT_FEATURES),
        transcendentals=B * OUT_FEATURES,
        bytes_accessed=4 * (B * IN_FEATURES + B * OUT_FEATURES
                            + OUT_FEATURES * (IN_FEATURES + 1)),
    )

    out_t = pl.pallas_call(
        _model_kernel,
        out_shape=jax.ShapeDtypeStruct((OUT_FEATURES, B), jnp.float32),
        grid=grid,
        in_specs=[
            pl.BlockSpec((IN_FEATURES, tb), lambda i: (0, i)),
            pl.BlockSpec(memory_space=pltpu.MemorySpace.SMEM),   # weight (3, 6)
            pl.BlockSpec(memory_space=pltpu.MemorySpace.SMEM),   # bias (3,)
        ],
        out_specs=pl.BlockSpec((OUT_FEATURES, tb), lambda i: (0, i)),
        compiler_params=pltpu.CompilerParams(
            dimension_semantics=("parallel",),
            vmem_limit_bytes=32 * 1024 * 1024,
        ),
        cost_estimate=cost,
    )(x_t, weight, bias)

    u = out_t.T  # (B, 3)
    return u, u  # u and v are identical by construction


def _reference(x, weight, bias):
    """Pure-JAX reference of the same (weight[:, :3]-restricted) semantics."""
    h = x @ weight.T + bias
    s = jax.nn.sigmoid(h)
    w3 = weight[:, :OUT_FEATURES]
    uv = s @ w3.T + bias
    return uv, uv


if __name__ == "__main__":
    key = jax.random.PRNGKey(0)
    k_x, k_w, k_b, k_x2 = jax.random.split(key, 4)

    # Deterministic PyTorch-style init: U(-1/sqrt(fan_in), 1/sqrt(fan_in))
    bound = 1.0 / (IN_FEATURES ** 0.5)
    weight = jax.random.uniform(
        k_w, (OUT_FEATURES, IN_FEATURES), jnp.float32, -bound, bound)
    bias = jax.random.uniform(k_b, (OUT_FEATURES,), jnp.float32, -bound, bound)

    fwd = jax.jit(model_forward)  # fuses the wrapper transposes with the call

    # Spec-sized case (B=2): single block, full-extent lane dim.
    B = 2
    x = jax.random.normal(k_x, (B, IN_FEATURES), dtype=jnp.float32)
    u, v = fwd(x, weight, bias)
    u = jax.block_until_ready(u)
    v = jax.block_until_ready(v)
    u_ref, v_ref = _reference(x, weight, bias)
    assert jnp.allclose(u, u_ref, atol=1e-5, rtol=1e-5)
    assert jnp.allclose(v, v_ref, atol=1e-5, rtol=1e-5)

    # Larger batch: exercises the multi-block grid with a ragged last block
    # (B not a multiple of TILE_B, no padding pass).
    B2 = 70000
    x2 = jax.random.normal(k_x2, (B2, IN_FEATURES), dtype=jnp.float32)
    u2, v2 = fwd(x2, weight, bias)
    u2 = jax.block_until_ready(u2)
    v2 = jax.block_until_ready(v2)
    u2_ref, v2_ref = _reference(x2, weight, bias)
    assert jnp.allclose(u2, u2_ref, atol=1e-5, rtol=1e-5)
    assert jnp.allclose(v2, v2_ref, atol=1e-5, rtol=1e-5)

    print("KERNEL_OK")
</pallas_src>

<mosaic_0001>
module attributes {stable_mosaic.version = 11 : i64} {
  func.func @_model_kernel(%arg0: i32, %arg1: memref<6x2xf32, #tpu.memory_space<vmem>>, %arg2: memref<3x6xf32, #tpu.memory_space<smem>>, %arg3: memref<3xf32, #tpu.memory_space<smem>>, %arg4: memref<3x2xf32, #tpu.memory_space<vmem>>) attributes {dimension_semantics = [#tpu.dimension_semantics<parallel>], iteration_bounds = array<i64: 1>, scalar_prefetch = 0 : i64, scratch_operands = 0 : i64, tpu.core_type = #tpu.core_type<tc>, window_params = [{transform_indices = @transform_0, window_bounds = array<i64: 6, 2>}, {transform_indices = @transform_1, window_bounds = array<i64: 3, 6>}, {transform_indices = @transform_2, window_bounds = array<i64: 3>}, {transform_indices = @transform_3, window_bounds = array<i64: 3, 2>}]} {
    %c0 = arith.constant 0 : index
    %c0_0 = arith.constant 0 : index
    %0 = memref.load %arg2[%c0, %c0_0] : memref<3x6xf32, #tpu.memory_space<smem>>
    %c0_1 = arith.constant 0 : index
    %c0_2 = arith.constant 0 : index
    %1 = vector.load %arg1[%c0_1, %c0_2] : memref<6x2xf32, #tpu.memory_space<vmem>>, vector<1x2xf32>
    %2 = vector.broadcast %0 : f32 to vector<1x2xf32>
    %3 = arith.mulf %2, %1 : vector<1x2xf32>
    %c0_3 = arith.constant 0 : index
    %c1 = arith.constant 1 : index
    %4 = memref.load %arg2[%c0_3, %c1] : memref<3x6xf32, #tpu.memory_space<smem>>
    %c1_4 = arith.constant 1 : index
    %c0_5 = arith.constant 0 : index
    %5 = vector.load %arg1[%c1_4, %c0_5] : memref<6x2xf32, #tpu.memory_space<vmem>>, vector<1x2xf32>
    %6 = vector.broadcast %4 : f32 to vector<1x2xf32>
    %7 = arith.mulf %6, %5 : vector<1x2xf32>
    %8 = arith.addf %3, %7 : vector<1x2xf32>
    %c0_6 = arith.constant 0 : index
    %c2 = arith.constant 2 : index
    %9 = memref.load %arg2[%c0_6, %c2] : memref<3x6xf32, #tpu.memory_space<smem>>
    %c2_7 = arith.constant 2 : index
    %c0_8 = arith.constant 0 : index
    %10 = vector.load %arg1[%c2_7, %c0_8] : memref<6x2xf32, #tpu.memory_space<vmem>>, vector<1x2xf32>
    %11 = vector.broadcast %9 : f32 to vector<1x2xf32>
    %12 = arith.mulf %11, %10 : vector<1x2xf32>
    %13 = arith.addf %8, %12 : vector<1x2xf32>
    %c0_9 = arith.constant 0 : index
    %c3 = arith.constant 3 : index
    %14 = memref.load %arg2[%c0_9, %c3] : memref<3x6xf32, #tpu.memory_space<smem>>
    %c3_10 = arith.constant 3 : index
    %c0_11 = arith.constant 0 : index
    %15 = vector.load %arg1[%c3_10, %c0_11] : memref<6x2xf32, #tpu.memory_space<vmem>>, vector<1x2xf32>
    %16 = vector.broadcast %14 : f32 to vector<1x2xf32>
    %17 = arith.mulf %16, %15 : vector<1x2xf32>
    %18 = arith.addf %13, %17 : vector<1x2xf32>
    %c0_12 = arith.constant 0 : index
    %c4 = arith.constant 4 : index
    %19 = memref.load %arg2[%c0_12, %c4] : memref<3x6xf32, #tpu.memory_space<smem>>
    %c4_13 = arith.constant 4 : index
    %c0_14 = arith.constant 0 : index
    %20 = vector.load %arg1[%c4_13, %c0_14] : memref<6x2xf32, #tpu.memory_space<vmem>>, vector<1x2xf32>
    %21 = vector.broadcast %19 : f32 to vector<1x2xf32>
    %22 = arith.mulf %21, %20 : vector<1x2xf32>
    %23 = arith.addf %18, %22 : vector<1x2xf32>
    %c0_15 = arith.constant 0 : index
    %c5 = arith.constant 5 : index
    %24 = memref.load %arg2[%c0_15, %c5] : memref<3x6xf32, #tpu.memory_space<smem>>
    %c5_16 = arith.constant 5 : index
    %c0_17 = arith.constant 0 : index
    %25 = vector.load %arg1[%c5_16, %c0_17] : memref<6x2xf32, #tpu.memory_space<vmem>>, vector<1x2xf32>
    %26 = vector.broadcast %24 : f32 to vector<1x2xf32>
    %27 = arith.mulf %26, %25 : vector<1x2xf32>
    %28 = arith.addf %23, %27 : vector<1x2xf32>
    %c0_18 = arith.constant 0 : index
    %29 = memref.load %arg3[%c0_18] : memref<3xf32, #tpu.memory_space<smem>>
    %30 = vector.broadcast %29 : f32 to vector<1x2xf32>
    %31 = arith.addf %28, %30 : vector<1x2xf32>
    %cst = arith.constant 5.000000e-01 : f32
    %32 = vector.broadcast %cst : f32 to vector<1x2xf32>
    %33 = arith.mulf %32, %31 : vector<1x2xf32>
    %34 = math.tanh %33 : vector<1x2xf32>
    %cst_19 = arith.constant 5.000000e-01 : f32
    %35 = vector.broadcast %cst_19 : f32 to vector<1x2xf32>
    %36 = arith.mulf %35, %34 : vector<1x2xf32>
    %cst_20 = arith.constant 5.000000e-01 : f32
    %37 = vector.broadcast %cst_20 : f32 to vector<1x2xf32>
    %38 = arith.addf %36, %37 : vector<1x2xf32>
    %c1_21 = arith.constant 1 : index
    %c0_22 = arith.constant 0 : index
    %39 = memref.load %arg2[%c1_21, %c0_22] : memref<3x6xf32, #tpu.memory_space<smem>>
    %c0_23 = arith.constant 0 : index
    %c0_24 = arith.constant 0 : index
    %40 = vector.load %arg1[%c0_23, %c0_24] : memref<6x2xf32, #tpu.memory_space<vmem>>, vector<1x2xf32>
    %41 = vector.broadcast %39 : f32 to vector<1x2xf32>
    %42 = arith.mulf %41, %40 : vector<1x2xf32>
    %c1_25 = arith.constant 1 : index
    %c1_26 = arith.constant 1 : index
    %43 = memref.load %arg2[%c1_25, %c1_26] : memref<3x6xf32, #tpu.memory_space<smem>>
    %c1_27 = arith.constant 1 : index
    %c0_28 = arith.constant 0 : index
    %44 = vector.load %arg1[%c1_27, %c0_28] : memref<6x2xf32, #tpu.memory_space<vmem>>, vector<1x2xf32>
    %45 = vector.broadcast %43 : f32 to vector<1x2xf32>
    %46 = arith.mulf %45, %44 : vector<1x2xf32>
    %47 = arith.addf %42, %46 : vector<1x2xf32>
    %c1_29 = arith.constant 1 : index
    %c2_30 = arith.constant 2 : index
    %48 = memref.load %arg2[%c1_29, %c2_30] : memref<3x6xf32, #tpu.memory_space<smem>>
    %c2_31 = arith.constant 2 : index
    %c0_32 = arith.constant 0 : index
    %49 = vector.load %arg1[%c2_31, %c0_32] : memref<6x2xf32, #tpu.memory_space<vmem>>, vector<1x2xf32>
    %50 = vector.broadcast %48 : f32 to vector<1x2xf32>
    %51 = arith.mulf %50, %49 : vector<1x2xf32>
    %52 = arith.addf %47, %51 : vector<1x2xf32>
    %c1_33 = arith.constant 1 : index
    %c3_34 = arith.constant 3 : index
    %53 = memref.load %arg2[%c1_33, %c3_34] : memref<3x6xf32, #tpu.memory_space<smem>>
    %c3_35 = arith.constant 3 : index
    %c0_36 = arith.constant 0 : index
    %54 = vector.load %arg1[%c3_35, %c0_36] : memref<6x2xf32, #tpu.memory_space<vmem>>, vector<1x2xf32>
    %55 = vector.broadcast %53 : f32 to vector<1x2xf32>
    %56 = arith.mulf %55, %54 : vector<1x2xf32>
    %57 = arith.addf %52, %56 : vector<1x2xf32>
    %c1_37 = arith.constant 1 : index
    %c4_38 = arith.constant 4 : index
    %58 = memref.load %arg2[%c1_37, %c4_38] : memref<3x6xf32, #tpu.memory_space<smem>>
    %c4_39 = arith.constant 4 : index
    %c0_40 = arith.constant 0 : index
    %59 = vector.load %arg1[%c4_39, %c0_40] : memref<6x2xf32, #tpu.memory_space<vmem>>, vector<1x2xf32>
    %60 = vector.broadcast %58 : f32 to vector<1x2xf32>
    %61 = arith.mulf %60, %59 : vector<1x2xf32>
    %62 = arith.addf %57, %61 : vector<1x2xf32>
    %c1_41 = arith.constant 1 : index
    %c5_42 = arith.constant 5 : index
    %63 = memref.load %arg2[%c1_41, %c5_42] : memref<3x6xf32, #tpu.memory_space<smem>>
    %c5_43 = arith.constant 5 : index
    %c0_44 = arith.constant 0 : index
    %64 = vector.load %arg1[%c5_43, %c0_44] : memref<6x2xf32, #tpu.memory_space<vmem>>, vector<1x2xf32>
    %65 = vector.broadcast %63 : f32 to vector<1x2xf32>
    %66 = arith.mulf %65, %64 : vector<1x2xf32>
    %67 = arith.addf %62, %66 : vector<1x2xf32>
    %c1_45 = arith.constant 1 : index
    %68 = memref.load %arg3[%c1_45] : memref<3xf32, #tpu.memory_space<smem>>
    %69 = vector.broadcast %68 : f32 to vector<1x2xf32>
    %70 = arith.addf %67, %69 : vector<1x2xf32>
    %cst_46 = arith.constant 5.000000e-01 : f32
    %71 = vector.broadcast %cst_46 : f32 to vector<1x2xf32>
    %72 = arith.mulf %71, %70 : vector<1x2xf32>
    %73 = math.tanh %72 : vector<1x2xf32>
    %cst_47 = arith.constant 5.000000e-01 : f32
    %74 = vector.broadcast %cst_47 : f32 to vector<1x2xf32>
    %75 = arith.mulf %74, %73 : vector<1x2xf32>
    %cst_48 = arith.constant 5.000000e-01 : f32
    %76 = vector.broadcast %cst_48 : f32 to vector<1x2xf32>
    %77 = arith.addf %75, %76 : vector<1x2xf32>
    %c2_49 = arith.constant 2 : index
    %c0_50 = arith.constant 0 : index
    %78 = memref.load %arg2[%c2_49, %c0_50] : memref<3x6xf32, #tpu.memory_space<smem>>
    %c0_51 = arith.constant 0 : index
    %c0_52 = arith.constant 0 : index
    %79 = vector.load %arg1[%c0_51, %c0_52] : memref<6x2xf32, #tpu.memory_space<vmem>>, vector<1x2xf32>
    %80 = vector.broadcast %78 : f32 to vector<1x2xf32>
    %81 = arith.mulf %80, %79 : vector<1x2xf32>
    %c2_53 = arith.constant 2 : index
    %c1_54 = arith.constant 1 : index
    %82 = memref.load %arg2[%c2_53, %c1_54] : memref<3x6xf32, #tpu.memory_space<smem>>
    %c1_55 = arith.constant 1 : index
    %c0_56 = arith.constant 0 : index
    %83 = vector.load %arg1[%c1_55, %c0_56] : memref<6x2xf32, #tpu.memory_space<vmem>>, vector<1x2xf32>
    %84 = vector.broadcast %82 : f32 to vector<1x2xf32>
    %85 = arith.mulf %84, %83 : vector<1x2xf32>
    %86 = arith.addf %81, %85 : vector<1x2xf32>
    %c2_57 = arith.constant 2 : index
    %c2_58 = arith.constant 2 : index
    %87 = memref.load %arg2[%c2_57, %c2_58] : memref<3x6xf32, #tpu.memory_space<smem>>
    %c2_59 = arith.constant 2 : index
    %c0_60 = arith.constant 0 : index
    %88 = vector.load %arg1[%c2_59, %c0_60] : memref<6x2xf32, #tpu.memory_space<vmem>>, vector<1x2xf32>
    %89 = vector.broadcast %87 : f32 to vector<1x2xf32>
    %90 = arith.mulf %89, %88 : vector<1x2xf32>
    %91 = arith.addf %86, %90 : vector<1x2xf32>
    %c2_61 = arith.constant 2 : index
    %c3_62 = arith.constant 3 : index
    %92 = memref.load %arg2[%c2_61, %c3_62] : memref<3x6xf32, #tpu.memory_space<smem>>
    %c3_63 = arith.constant 3 : index
    %c0_64 = arith.constant 0 : index
    %93 = vector.load %arg1[%c3_63, %c0_64] : memref<6x2xf32, #tpu.memory_space<vmem>>, vector<1x2xf32>
    %94 = vector.broadcast %92 : f32 to vector<1x2xf32>
    %95 = arith.mulf %94, %93 : vector<1x2xf32>
    %96 = arith.addf %91, %95 : vector<1x2xf32>
    %c2_65 = arith.constant 2 : index
    %c4_66 = arith.constant 4 : index
    %97 = memref.load %arg2[%c2_65, %c4_66] : memref<3x6xf32, #tpu.memory_space<smem>>
    %c4_67 = arith.constant 4 : index
    %c0_68 = arith.constant 0 : index
    %98 = vector.load %arg1[%c4_67, %c0_68] : memref<6x2xf32, #tpu.memory_space<vmem>>, vector<1x2xf32>
    %99 = vector.broadcast %97 : f32 to vector<1x2xf32>
    %100 = arith.mulf %99, %98 : vector<1x2xf32>
    %101 = arith.addf %96, %100 : vector<1x2xf32>
    %c2_69 = arith.constant 2 : index
    %c5_70 = arith.constant 5 : index
    %102 = memref.load %arg2[%c2_69, %c5_70] : memref<3x6xf32, #tpu.memory_space<smem>>
    %c5_71 = arith.constant 5 : index
    %c0_72 = arith.constant 0 : index
    %103 = vector.load %arg1[%c5_71, %c0_72] : memref<6x2xf32, #tpu.memory_space<vmem>>, vector<1x2xf32>
    %104 = vector.broadcast %102 : f32 to vector<1x2xf32>
    %105 = arith.mulf %104, %103 : vector<1x2xf32>
    %106 = arith.addf %101, %105 : vector<1x2xf32>
    %c2_73 = arith.constant 2 : index
    %107 = memref.load %arg3[%c2_73] : memref<3xf32, #tpu.memory_space<smem>>
    %108 = vector.broadcast %107 : f32 to vector<1x2xf32>
    %109 = arith.addf %106, %108 : vector<1x2xf32>
    %cst_74 = arith.constant 5.000000e-01 : f32
    %110 = vector.broadcast %cst_74 : f32 to vector<1x2xf32>
    %111 = arith.mulf %110, %109 : vector<1x2xf32>
    %112 = math.tanh %111 : vector<1x2xf32>
    %cst_75 = arith.constant 5.000000e-01 : f32
    %113 = vector.broadcast %cst_75 : f32 to vector<1x2xf32>
    %114 = arith.mulf %113, %112 : vector<1x2xf32>
    %cst_76 = arith.constant 5.000000e-01 : f32
    %115 = vector.broadcast %cst_76 : f32 to vector<1x2xf32>
    %116 = arith.addf %114, %115 : vector<1x2xf32>
    %c0_77 = arith.constant 0 : index
    %c0_78 = arith.constant 0 : index
    %117 = memref.load %arg2[%c0_77, %c0_78] : memref<3x6xf32, #tpu.memory_space<smem>>
    %118 = vector.broadcast %117 : f32 to vector<1x2xf32>
    %119 = arith.mulf %118, %38 : vector<1x2xf32>
    %c0_79 = arith.constant 0 : index
    %c1_80 = arith.constant 1 : index
    %120 = memref.load %arg2[%c0_79, %c1_80] : memref<3x6xf32, #tpu.memory_space<smem>>
    %121 = vector.broadcast %120 : f32 to vector<1x2xf32>
    %122 = arith.mulf %121, %77 : vector<1x2xf32>
    %123 = arith.addf %119, %122 : vector<1x2xf32>
    %c0_81 = arith.constant 0 : index
    %c2_82 = arith.constant 2 : index
    %124 = memref.load %arg2[%c0_81, %c2_82] : memref<3x6xf32, #tpu.memory_space<smem>>
    %125 = vector.broadcast %124 : f32 to vector<1x2xf32>
    %126 = arith.mulf %125, %116 : vector<1x2xf32>
    %127 = arith.addf %123, %126 : vector<1x2xf32>
    %c0_83 = arith.constant 0 : index
    %128 = memref.load %arg3[%c0_83] : memref<3xf32, #tpu.memory_space<smem>>
    %129 = vector.broadcast %128 : f32 to vector<1x2xf32>
    %130 = arith.addf %127, %129 : vector<1x2xf32>
    %c0_84 = arith.constant 0 : index
    %c0_85 = arith.constant 0 : index
    %131 = vector.load %arg4[%c0_84, %c0_85] : memref<3x2xf32, #tpu.memory_space<vmem>>, vector<1x2xf32>
    tpu.vector_store %arg4[%c0_84, %c0_85], %130 {strides = array<i32>} : memref<3x2xf32, #tpu.memory_space<vmem>>, vector<1x2xf32>,
    %c1_86 = arith.constant 1 : index
    %c0_87 = arith.constant 0 : index
    %132 = memref.load %arg2[%c1_86, %c0_87] : memref<3x6xf32, #tpu.memory_space<smem>>
    %133 = vector.broadcast %132 : f32 to vector<1x2xf32>
    %134 = arith.mulf %133, %38 : vector<1x2xf32>
    %c1_88 = arith.constant 1 : index
    %c1_89 = arith.constant 1 : index
    %135 = memref.load %arg2[%c1_88, %c1_89] : memref<3x6xf32, #tpu.memory_space<smem>>
    %136 = vector.broadcast %135 : f32 to vector<1x2xf32>
    %137 = arith.mulf %136, %77 : vector<1x2xf32>
    %138 = arith.addf %134, %137 : vector<1x2xf32>
    %c1_90 = arith.constant 1 : index
    %c2_91 = arith.constant 2 : index
    %139 = memref.load %arg2[%c1_90, %c2_91] : memref<3x6xf32, #tpu.memory_space<smem>>
    %140 = vector.broadcast %139 : f32 to vector<1x2xf32>
    %141 = arith.mulf %140, %116 : vector<1x2xf32>
    %142 = arith.addf %138, %141 : vector<1x2xf32>
    %c1_92 = arith.constant 1 : index
    %143 = memref.load %arg3[%c1_92] : memref<3xf32, #tpu.memory_space<smem>>
    %144 = vector.broadcast %143 : f32 to vector<1x2xf32>
    %145 = arith.addf %142, %144 : vector<1x2xf32>
    %c1_93 = arith.constant 1 : index
    %c0_94 = arith.constant 0 : index
    %146 = vector.load %arg4[%c1_93, %c0_94] : memref<3x2xf32, #tpu.memory_space<vmem>>, vector<1x2xf32>
    tpu.vector_store %arg4[%c1_93, %c0_94], %145 {strides = array<i32>} : memref<3x2xf32, #tpu.memory_space<vmem>>, vector<1x2xf32>,
    %c2_95 = arith.constant 2 : index
    %c0_96 = arith.constant 0 : index
    %147 = memref.load %arg2[%c2_95, %c0_96] : memref<3x6xf32, #tpu.memory_space<smem>>
    %148 = vector.broadcast %147 : f32 to vector<1x2xf32>
    %149 = arith.mulf %148, %38 : vector<1x2xf32>
    %c2_97 = arith.constant 2 : index
    %c1_98 = arith.constant 1 : index
    %150 = memref.load %arg2[%c2_97, %c1_98] : memref<3x6xf32, #tpu.memory_space<smem>>
    %151 = vector.broadcast %150 : f32 to vector<1x2xf32>
    %152 = arith.mulf %151, %77 : vector<1x2xf32>
    %153 = arith.addf %149, %152 : vector<1x2xf32>
    %c2_99 = arith.constant 2 : index
    %c2_100 = arith.constant 2 : index
    %154 = memref.load %arg2[%c2_99, %c2_100] : memref<3x6xf32, #tpu.memory_space<smem>>
    %155 = vector.broadcast %154 : f32 to vector<1x2xf32>
    %156 = arith.mulf %155, %116 : vector<1x2xf32>
    %157 = arith.addf %153, %156 : vector<1x2xf32>
    %c2_101 = arith.constant 2 : index
    %158 = memref.load %arg3[%c2_101] : memref<3xf32, #tpu.memory_space<smem>>
    %159 = vector.broadcast %158 : f32 to vector<1x2xf32>
    %160 = arith.addf %157, %159 : vector<1x2xf32>
    %c2_102 = arith.constant 2 : index
    %c0_103 = arith.constant 0 : index
    %161 = vector.load %arg4[%c2_102, %c0_103] : memref<3x2xf32, #tpu.memory_space<vmem>>, vector<1x2xf32>
    tpu.vector_store %arg4[%c2_102, %c0_103], %160 {strides = array<i32>} : memref<3x2xf32, #tpu.memory_space<vmem>>, vector<1x2xf32>,
    return
  }
  func.func @transform_0(%arg0: i32) -> (i32, i32) {
    %c0_i32 = arith.constant 0 : i32
    %c0_i32_0 = arith.constant 0 : i32
    return %c0_i32, %arg0 : i32, i32
  }
  func.func @transform_1(%arg0: i32) -> (i32, i32) {
    %c0_i32 = arith.constant 0 : i32
    %c0_i32_0 = arith.constant 0 : i32
    %c0_i32_1 = arith.constant 0 : i32
    return %c0_i32, %c0_i32_0 : i32, i32
  }
  func.func @transform_2(%arg0: i32) -> i32 {
    %c0_i32 = arith.constant 0 : i32
    %c0_i32_0 = arith.constant 0 : i32
    return %c0_i32 : i32
  }
  func.func @transform_3(%arg0: i32) -> (i32, i32) {
    %c0_i32 = arith.constant 0 : i32
    %c0_i32_0 = arith.constant 0 : i32
    return %c0_i32, %arg0 : i32, i32
  }
}

</mosaic_0001>

<bundles_post_ra>
// kernel: model_forward.1
= control target key start
LH: loop header
LB: loop body
LE: loop exit
PB: predicated region body
PF: predicated region fallthrough
CT: control target
= control target key end

     0   :  { %8 = vsyncpa [#allocation3], 0  ;;  %s357_s0 = inlined_call_operand.vmem [shape: f32[6,2], index: 0, kind: input, shape index: {}]   ;;  %s358_s1 = inlined_call_operand.vmem [shape: f32[3,6], index: 1, kind: input, shape index: {}]   ;;  %s359_s2 = inlined_call_operand.vmem [shape: f32[3], index: 2, kind: input, shape index: {}]   ;;  %s360_s3 = inlined_call_operand.vmem [shape: f32[3,2], index: 3, kind: output, shape index: {}]  }
   0x1   :  { %s17_s14 = sshll.u32 %s358_s1, 4  ;;  %s18_s14 = int_to_ptr.vmem [resolvable:$true] %s17_s14 }
   0x2   :  { %9 = vsyncpa [#allocation5], 0  ;;  %s26_s17 = sshll.u32 %s359_s2, 4  ;;  %s242_s18 = smov [#allocation2]   ;;  %s27_s17 = int_to_ptr.vmem [resolvable:$true] %s26_s17 }
   0x3   :  { %20 = dma.vmem_to_smem %s18_s14, 64, %s242_s18, [#allocation3]  }
   0x4   :  { %s243_s19 = smov [#allocation4]  }
   0x5   :  { %29 = dma.vmem_to_smem %s27_s17, 16, %s243_s19, [#allocation5]  }
   0x6   :  { %238 = dma.done.wait [#allocation3], 64  }
   0x7   :  { %239 = vsyncadd [#allocation3], 4294967232 }
   0x8   :  { %240 = dma.done.wait [#allocation5], 16  }
   0x9   :  { %241 = vsyncadd [#allocation5], 4294967280 }
   0xa   :  { %38 = sfence }
   0xb   :  { %s270_s20 = sld [smem:[#allocation2]]  ;;  %v40_v0 = vld [vmem:[%s357_s0] sm:$0x1]  ;;  %v44_v1 = vld [vmem:[%s357_s0 + $0x1] sm:$0x1]  ;;  %vm141_vm0 = vcmask 8192  }
   0xc   :  { %s272_s1 = sld [smem:[#allocation2 + $0x1]]  ;;  %v49_v3 = vld [vmem:[%s357_s0 + $0x2] sm:$0x1]  ;;  %v54_v6 = vld [vmem:[%s357_s0 + $0x3] sm:$0x1] }
   0xd   :  { %s274_s21 = sld [smem:[#allocation2 + $0x2]]  ;;  %v59_v11 = vld [vmem:[%s357_s0 + $0x4] sm:$0x1]  ;;  %v64_v15 = vld [vmem:[%s357_s0 + $0x5] sm:$0x1] }
   0xe   :  { %s181_s2 = sld [smem:[#allocation2 + $0x3]] }
   0xf   :  { %s182_s24 = sld [smem:[#allocation2 + $0x4]] }
  0x10   :  { %s183_s27 = sld [smem:[#allocation2 + $0x5]] }
  0x11   :  { %v41_v2 = vstv %s270_s20  ;;  %s286_s30 = sld [smem:[#allocation4]] }
  0x12   :  { %v42_v4 = vmul.f32 %v41_v2, %v40_v0  ;;  %v45_v5 = vstv %s272_s1  ;;  %s294_s6 = sld [smem:[#allocation2 + $0x80]] }
  0x13   :  { %v46_v7 = vmul.f32 %v45_v5, %v44_v1  ;;  %v50_v8 = vstv %s274_s21  ;;  %s299_s7 = sld [smem:[#allocation2 + $0x81]] }
  0x14   :  { %v51_v9 = vmul.f32 %v50_v8, %v49_v3  ;;  %v55_v10 = vstv %s181_s2  ;;  %s306_s10 = sld [smem:[#allocation2 + $0x82]] }
  0x15   :  { %v47_v12 = vadd.f32 %v46_v7, %v42_v4  ;;  %v56_v13 = vmul.f32 %v55_v10, %v54_v6  ;;  %v60_v14 = vstv %s182_s24  ;;  %s187_s11 = sld [smem:[#allocation2 + $0x83]] }
  0x16   :  { %v65_v16 = vstv %s183_s27  ;;  %s188_s14 = sld [smem:[#allocation2 + $0x84]]  ;;  %v61_v18 = vmul.f32 %v60_v14, %v59_v11 }
  0x17   :  { %v52_v17 = vadd.f32 %v51_v9, %v47_v12  ;;  %s189_s15 = sld [smem:[#allocation2 + $0x85]]  ;;  %v66_v21 = vmul.f32 %v65_v16, %v64_v15  ;;  %v69_v29 = vstv %s286_s30 }
  0x18   :  { %v76_v19 = vstv %s294_s6  ;;  %s312_s16 = sld [smem:[#allocation4 + $0x1]] }
  0x19   :  { %v57_v20 = vadd.f32 %v56_v13, %v52_v17  ;;  %v77_v22 = vmul.f32 %v76_v19, %v40_v0  ;;  %v79_v23 = vstv %s299_s7  ;;  %s317_s17 = sld [smem:[#allocation2 + $0x100]] }
  0x1a   :  { %v80_v24 = vmul.f32 %v79_v23, %v44_v1  ;;  %v83_v25 = vstv %s306_s10  ;;  %s320_s0 = sld [smem:[#allocation2 + $0x101]] }
  0x1b   :  { %v62_v26 = vadd.f32 %v61_v18, %v57_v20  ;;  %v84_v27 = vmul.f32 %v83_v25, %v49_v3  ;;  %v87_v28 = vstv %s187_s11  ;;  %s324_s18 = sld [smem:[#allocation2 + $0x102]] }
  0x1c   :  { %v81_v30 = vadd.f32 %v80_v24, %v77_v22  ;;  %v88_v31 = vmul.f32 %v87_v28, %v54_v6  ;;  %v91_v32 = vstv %s188_s14  ;;  %s194_s19 = sld [smem:[#allocation2 + $0x103]] }
  0x1d   :  { %v67_v33 = vadd.f32 %v66_v21, %v62_v26  ;;  %v95_v34 = vstv %s189_s15  ;;  %s195_s2 = sld [smem:[#allocation2 + $0x104]]  ;;  %v92_v36 = vmul.f32 %v91_v32, %v59_v11 }
  0x1e   :  { %v85_v35 = vadd.f32 %v84_v27, %v81_v30  ;;  %s196_s22 = sld [smem:[#allocation2 + $0x105]]  ;;  %v96_v40 = vmul.f32 %v95_v34, %v64_v15  ;;  %v99_v49 = vstv %s312_s16 }
  0x1f   :  { %v70_v37 = vadd.f32 %v69_v29, %v67_v33  ;;  %v106_v38 = vstv %s317_s17  ;;  %s332_s23 = sld [smem:[#allocation4 + $0x2]] }
  0x20   :  { %v89_v39 = vadd.f32 %v88_v31, %v85_v35  ;;  %v107_v41 = vmul.f32 %v106_v38, %v40_v0  ;;  %v109_v42 = vstv %s320_s0 }
  0x21   :  { %v71_v43 = vmul.f32 0.5, %v70_v37  ;;  %v110_v44 = vmul.f32 %v109_v42, %v44_v1  ;;  %v113_v45 = vstv %s324_s18 }
  0x22   :  { %v93_v46 = vadd.f32 %v92_v36, %v89_v39  ;;  %v114_v47 = vmul.f32 %v113_v45, %v49_v3  ;;  %v117_v48 = vstv %s194_s19 }
  0x23   :  { %v111_v50 = vadd.f32 %v110_v44, %v107_v41  ;;  %v118_v51 = vmul.f32 %v117_v48, %v54_v6  ;;  %v121_v52 = vstv %s195_s2  ;;  %208 = vtanh.f32 %v71_v43 }
  0x24   :  { %v97_v53 = vadd.f32 %v96_v40, %v93_v46  ;;  %v125_v54 = vstv %s196_s22  ;;  %v122_v56 = vmul.f32 %v121_v52, %v59_v11 }
  0x25   :  { %v115_v55 = vadd.f32 %v114_v47, %v111_v50  ;;  %v126_v59 = vmul.f32 %v125_v54, %v64_v15  ;;  %v129_v63 = vstv %s332_s23 }
  0x26   :  { %v100_v57 = vadd.f32 %v99_v49, %v97_v53 }
  0x27   :  { %v119_v58 = vadd.f32 %v118_v51, %v115_v55 }
  0x28   :  { %v101_v60 = vmul.f32 0.5, %v100_v57 }
  0x29   :  { %v123_v61 = vadd.f32 %v122_v56, %v119_v58  ;;  %v209_v62 = vpop.eup %208 }
  0x2a   :  { %210 = vtanh.f32 %v101_v60  ;;  %v73_v1 = vmul.f32 0.5, %v209_v62 }
  0x2b   :  { %v127_v0 = vadd.f32 %v126_v59, %v123_v61 }
  0x2c   :  { %v74_v7 = vadd.f32 0.5, %v73_v1 }
  0x2d   :  { %v130_v3 = vadd.f32 %v129_v63, %v127_v0 }
  0x2e   :  { %v135_v11 = vmul.f32 %v74_v7, %v41_v2  ;;  %v145_v12 = vmul.f32 %v76_v19, %v74_v7  ;;  %v160_v15 = vmul.f32 %v106_v38, %v74_v7 }
  0x2f   :  { %v131_v4 = vmul.f32 0.5, %v130_v3 }
  0x30   :  { %v211_v6 = vpop.eup %210 }
  0x31   :  { %v103_v9 = vmul.f32 0.5, %v211_v6  ;;  %212 = vtanh.f32 %v131_v4 }
  0x33   :  { %v104_v10 = vadd.f32 0.5, %v103_v9 }
  0x35   :  { %v136_v13 = vmul.f32 %v104_v10, %v45_v5  ;;  %v148_v14 = vmul.f32 %v104_v10, %v79_v23  ;;  %v163_v16 = vmul.f32 %v109_v42, %v104_v10 }
  0x37   :  { %v213_v17 = vpop.eup %212  ;;  %v137_v21 = vadd.f32 %v136_v13, %v135_v11  ;;  %v149_v22 = vadd.f32 %v148_v14, %v145_v12  ;;  %v164_v24 = vadd.f32 %v163_v16, %v160_v15 }
  0x38   :  { %v133_v18 = vmul.f32 0.5, %v213_v17 }
  0x3a   :  { %v134_v20 = vadd.f32 0.5, %v133_v18 }
  0x3c   :  { %v138_v26 = vmul.f32 %v134_v20, %v50_v8  ;;  %v152_v27 = vmul.f32 %v134_v20, %v83_v25  ;;  %v167_v28 = vmul.f32 %v134_v20, %v113_v45 }
  0x3e   :  { %v139_v2 = vadd.f32 %v138_v26, %v137_v21  ;;  %v153_v30 = vadd.f32 %v152_v27, %v149_v22  ;;  %v168_v19 = vadd.f32 %v167_v28, %v164_v24 }
  0x40   :  { %v140_v5 = vadd.f32 %v139_v2, %v69_v29  ;;  %v156_v23 = vadd.f32 %v153_v30, %v99_v49  ;;  %v171_v31 = vadd.f32 %v168_v19, %v129_v63 }
  0x42   :  { %142 = vst.msk [vmem:[%s360_s3] sm:$0x1] %vm141_vm0, %v140_v5 }
  0x43   :  { %157 = vst.msk [vmem:[%s360_s3 + $0x1] sm:$0x1] %vm141_vm0, %v156_v23 }
  0x44   :  { %172 = vst.msk [vmem:[%s360_s3 + $0x2] sm:$0x1] %vm141_vm0, %v171_v31 }
  0x45   :  { %177 = vsyncpa [#allocation3], 1 }
  0x46   :  { %178 = vsyncpa [#allocation5], 1 }

</bundles_post_ra>
